<compile_context>
chip_gen: v7x
topology: tpu7x:2x2x1
jax: 0.10.0
libtpu: 0.0.40
codegen_flags: <defaults>
</compile_context>

<pallas_src>
import jax
import jax.numpy as jnp
from jax.experimental import pallas as pl
from jax.experimental.pallas import tpu as pltpu

_MIB = 1024 * 1024


def _round_up(n: int, m: int) -> int:
    return ((n + m - 1) // m) * m


def _vector_attention_kernel(x_ref, w_ref, b_ref, o_ref):
    # x_ref: (TM, D)   w_ref: (D, D) == W^T (bf16)   b_ref: (1, D) f32   o_ref: (TM, D)
    x = x_ref[...]
    # MXU: bf16 x bf16 -> f32 accumulate.
    ctx = jnp.dot(x.astype(w_ref.dtype), w_ref[...],
                  preferred_element_type=jnp.float32)
    ctx = ctx + b_ref[...]

    # Softmax over the feature (lane) dim, all in f32.
    m = jnp.max(ctx, axis=-1, keepdims=True)
    e = jnp.exp(ctx - m)
    inv = pl.reciprocal(jnp.sum(e, axis=-1, keepdims=True), approx=True)  # EUP vrcp

    # Fused gate: softmax(ctx) * x == (e * x) * (1 / sum(e)); x kept in original dtype.
    o_ref[...] = ((e * x.astype(jnp.float32)) * inv).astype(o_ref.dtype)


def _vmem_ceiling_bytes() -> int:
    """Per-generation VMEM request ceiling with headroom for internal scratch."""
    cap = None
    if hasattr(pltpu, "get_tpu_info"):
        try:
            cap = getattr(pltpu.get_tpu_info(), "vmem_capacity_bytes", None)
        except Exception:  # capability query only; never hides kernel errors
            cap = None
    if not cap:
        cap = 64 * _MIB  # conservative default == v7x per-core physical size
    if cap > 96 * _MIB:
        # v5e / v6e: 128 MiB physical -> leave 16 MiB headroom.
        return int(cap - 16 * _MIB)
    # v7x: 64 MiB total -> back off to ~48 MiB.
    return int((3 * cap) // 4)


def _footprint_bytes(tm: int, D: int, x_item: int, w_item: int) -> int:
    return (2 * tm * D * x_item          # x, double-buffered
            + 2 * tm * D * x_item        # out, double-buffered
            + 2 * D * D * w_item         # resident weight (worst case 2 buffers)
            + 2 * D * 4                  # bias
            + 4 * tm * D * 4)            # f32 intermediates headroom


def prepare_params(weight, bias, *, matmul_dtype=jnp.bfloat16):
    """Hoisted param prep: torch Linear (out,in) weight -> bf16 W^T, bias -> (1,D) f32."""
    w_t = jnp.asarray(weight).T.astype(matmul_dtype)       # (D_in, D_out)
    b2d = jnp.asarray(bias, jnp.float32).reshape(1, -1)    # (1, D)
    return w_t, b2d


def vector_attention(x, w_t, b2d, *, tm=512):
    """x: (..., D); w_t: (D, D) pre-transposed (bf16); b2d: (1, D) f32."""
    orig_shape = x.shape
    D = orig_shape[-1]
    x2d = x.reshape(-1, D)
    rows = x2d.shape[0]
    if rows == 0:
        return x

    x_item = jnp.dtype(x.dtype).itemsize
    w_item = jnp.dtype(w_t.dtype).itemsize
    ceiling = _vmem_ceiling_bytes()

    # Row tile: sublane-aligned, as large as the request / row count allows, shrunk
    # (not retried) if the VMEM footprint would exceed the per-generation ceiling.
    tm_eff = max(8, _round_up(min(tm, _round_up(rows, 8)), 8))
    while tm_eff > 8 and _footprint_bytes(tm_eff, D, x_item, w_item) > ceiling:
        tm_eff = max(8, _round_up(tm_eff // 2, 8))

    footprint = _footprint_bytes(tm_eff, D, x_item, w_item)
    floor = min(32 * _MIB, ceiling)
    vmem_limit = int(max(floor, min(ceiling, footprint + 16 * _MIB)))

    grid = (pl.cdiv(rows, tm_eff),)   # ragged tail handled by Pallas partial block

    grid_spec = pltpu.PrefetchScalarGridSpec(
        num_scalar_prefetch=0,
        grid=grid,
        in_specs=[
            pl.BlockSpec((tm_eff, D), lambda i: (i, 0)),   # x row tile
            pl.BlockSpec((D, D), lambda i: (0, 0)),        # full W^T, resident
            pl.BlockSpec((1, D), lambda i: (0, 0)),        # bias
        ],
        out_specs=pl.BlockSpec((tm_eff, D), lambda i: (i, 0)),
    )

    out = pl.pallas_call(
        _vector_attention_kernel,
        out_shape=jax.ShapeDtypeStruct((rows, D), x.dtype),
        grid_spec=grid_spec,
        compiler_params=pltpu.CompilerParams(
            dimension_semantics=("parallel",),
            vmem_limit_bytes=vmem_limit,
        ),
    )(x2d, w_t, b2d)

    return out.reshape(orig_shape)


def _reference(x, weight, bias):
    ctx = jnp.einsum("...i,oi->...o", x, weight) + bias
    scores = jax.nn.softmax(ctx, axis=-1)
    return scores * x


if __name__ == "__main__":
    key = jax.random.PRNGKey(0)
    kx, kw, kb = jax.random.split(key, 3)

    B, S, D = 2, 8, 128   # rows = 16, D lane-aligned
    x = jax.random.normal(kx, (B, S, D), dtype=jnp.float32)

    # Deterministic "nn.Linear(in_size, in_size)" parameters (torch-style uniform bound).
    bound = 1.0 / jnp.sqrt(jnp.float32(D))
    weight = jax.random.uniform(kw, (D, D), jnp.float32, -bound, bound)   # (out, in)
    bias = jax.random.uniform(kb, (D,), jnp.float32, -bound, bound)

    w_t, b2d = prepare_params(weight, bias)          # hoisted out of the hot path
    out = jax.block_until_ready(vector_attention(x, w_t, b2d))

    ref = _reference(x, weight, bias)
    assert out.shape == x.shape
    err = float(jnp.max(jnp.abs(out - ref)))
    # bf16 MXU operands + approx reciprocal => ~1e-4 abs error budget on gated outputs.
    assert jnp.allclose(out, ref, atol=2e-3, rtol=2e-3), err

    print("KERNEL_OK")
</pallas_src>

<mosaic_0001>
module attributes {stable_mosaic.version = 11 : i64} {
  func.func @_vector_attention_kernel(%arg0: i32, %arg1: memref<16x128xf32, #tpu.memory_space<vmem>>, %arg2: memref<128x128xbf16, #tpu.memory_space<vmem>>, %arg3: memref<1x128xf32, #tpu.memory_space<vmem>>, %arg4: memref<16x128xf32, #tpu.memory_space<vmem>>) attributes {dimension_semantics = [#tpu.dimension_semantics<parallel>], iteration_bounds = array<i64: 1>, scalar_prefetch = 0 : i64, scratch_operands = 0 : i64, tpu.core_type = #tpu.core_type<tc>, window_params = [{transform_indices = @transform_0, window_bounds = array<i64: 16, 128>}, {pipeline_mode = #tpu.pipeline_mode<synchronous>, transform_indices = @transform_1, window_bounds = array<i64: 128, 128>}, {pipeline_mode = #tpu.pipeline_mode<synchronous>, transform_indices = @transform_2, window_bounds = array<i64: 1, 128>}, {transform_indices = @transform_3, window_bounds = array<i64: 16, 128>}]} {
    %c0 = arith.constant 0 : index
    %c0_0 = arith.constant 0 : index
    %0 = vector.load %arg1[%c0, %c0_0] : memref<16x128xf32, #tpu.memory_space<vmem>>, vector<16x128xf32>
    %1 = arith.truncf %0 : vector<16x128xf32> to vector<16x128xbf16>
    %c0_1 = arith.constant 0 : index
    %c0_2 = arith.constant 0 : index
    %2 = vector.load %arg2[%c0_1, %c0_2] : memref<128x128xbf16, #tpu.memory_space<vmem>>, vector<128x128xbf16>
    %cst = arith.constant dense<0.000000e+00> : vector<16x128xf32>
    %3 = tpu.matmul %1, %2, %cst {dimension_numbers = #tpu.dot_dimension_numbers<[1], [0], [0], [1], [0, 0, 1, 1], [], []>} : vector<16x128xbf16>, vector<128x128xbf16>, vector<16x128xf32> -> vector<16x128xf32>
    %c0_3 = arith.constant 0 : index
    %c0_4 = arith.constant 0 : index
    %4 = vector.load %arg3[%c0_3, %c0_4] : memref<1x128xf32, #tpu.memory_space<vmem>>, vector<1x128xf32>
    %5 = vector.broadcast %4 : vector<1x128xf32> to vector<16x128xf32>
    %6 = arith.addf %3, %5 : vector<16x128xf32>
    %cst_5 = arith.constant dense<0xFF800000> : vector<16xf32>
    %7 = vector.multi_reduction <maximumf>, %6, %cst_5 [1] : vector<16x128xf32> to vector<16xf32>
    %8 = vector.shape_cast %7 : vector<16xf32> to vector<16x1xf32>
    %9 = vector.broadcast %8 : vector<16x1xf32> to vector<16x128xf32>
    %10 = arith.subf %6, %9 : vector<16x128xf32>
    %11 = math.exp %10 : vector<16x128xf32>
    %cst_6 = arith.constant dense<0.000000e+00> : vector<16xf32>
    %12 = vector.multi_reduction <add>, %11, %cst_6 [1] : vector<16x128xf32> to vector<16xf32>
    %13 = vector.shape_cast %12 : vector<16xf32> to vector<16x1xf32>
    %14 = tpu.reciprocal %13 {approx = true} : vector<16x1xf32> -> vector<16x1xf32>
    %15 = arith.mulf %11, %0 : vector<16x128xf32>
    %16 = vector.broadcast %14 : vector<16x1xf32> to vector<16x128xf32>
    %17 = arith.mulf %15, %16 : vector<16x128xf32>
    %c0_7 = arith.constant 0 : index
    %c0_8 = arith.constant 0 : index
    %18 = vector.load %arg4[%c0_7, %c0_8] : memref<16x128xf32, #tpu.memory_space<vmem>>, vector<16x128xf32>
    tpu.vector_store %arg4[%c0_7, %c0_8], %17 {strides = array<i32>} : memref<16x128xf32, #tpu.memory_space<vmem>>, vector<16x128xf32>,
    return
  }
  func.func @transform_0(%arg0: i32) -> (i32, i32) {
    %c0_i32 = arith.constant 0 : i32
    %c0_i32_0 = arith.constant 0 : i32
    return %arg0, %c0_i32 : i32, i32
  }
  func.func @transform_1(%arg0: i32) -> (i32, i32) {
    %c0_i32 = arith.constant 0 : i32
    %c0_i32_0 = arith.constant 0 : i32
    %c0_i32_1 = arith.constant 0 : i32
    return %c0_i32, %c0_i32_0 : i32, i32
  }
  func.func @transform_2(%arg0: i32) -> (i32, i32) {
    %c0_i32 = arith.constant 0 : i32
    %c0_i32_0 = arith.constant 0 : i32
    %c0_i32_1 = arith.constant 0 : i32
    return %c0_i32, %c0_i32_0 : i32, i32
  }
  func.func @transform_3(%arg0: i32) -> (i32, i32) {
    %c0_i32 = arith.constant 0 : i32
    %c0_i32_0 = arith.constant 0 : i32
    return %arg0, %c0_i32 : i32, i32
  }
}

</mosaic_0001>

<bundles_post_ra>
// kernel: tpu_custom_call.1
= control target key start
LH: loop header
LB: loop body
LE: loop exit
PB: predicated region body
PF: predicated region fallthrough
CT: control target
= control target key end

     0   :  { %8 = vsyncpa [#allocation3], 0  ;;  %s408_s0 = inlined_call_operand.hbm [shape: f32[16,128], index: 0, kind: input, shape index: {}]   ;;  %s409_s1 = inlined_call_operand.hbm [shape: bf16[128,128], index: 1, kind: input, shape index: {}]   ;;  %s410_s2 = inlined_call_operand.vmem [shape: f32[1,128], index: 2, kind: input, shape index: {}]   ;;  %s411_s3 = inlined_call_operand.hbm [shape: f32[16,128], index: 3, kind: output, shape index: {}]  }
   0x1   :  { %9 = vsyncpa [#allocation6], 0 }
   0x2   :  { %10 = vsyncpa [#allocation4], 0  ;;  %s334_s12 = smov [#allocation2]   ;;  %s262_s16 = scalar_lea.hbm %s408_s0, 256 }
   0x3   :  { %s16_s13 = sshll.u32 %s334_s12, 4  ;;  %p263_p0 = scmp.ne.s32.totalorder %s408_s0, %s262_s16  ;;  %s17_s13 = int_to_ptr.vmem [resolvable:$true] %s16_s13 }
   0x4   :  { %p266_p1 = scmp.lt.u32.totalorder %s262_s16, %s408_s0 }
   0x6   :  { %p268_p2 = pnand %p266_p1, %p263_p0 }
   0x8   :  { %271 = shalt.err (!%p268_p2)
}
   0x9   :  { %s272_s21 = scalar_lea.vmem %s17_s13, 256  ;;  %p277_p4 = scmp.lt.s32.totalorder %s17_s13, %s17_s13 }
   0xa   :  { %p273_p3 = scmp.ne.s32.totalorder %s17_s13, %s272_s21  ;;  %p278_p5 = scmp.lt.s32.totalorder %s272_s21, %s272_s21 }
   0xc   :  { %p279_p6 = por %p278_p5, %p277_p4 }
   0xe   :  { %p280_p7 = pnand %p279_p6, %p273_p3 }
  0x10   :  { %283 = shalt.err (!%p280_p7)
}
  0x11   :  { %s335_s22 = smov 128   ;;  %s336_s23 = smov 8  }
  0x12   :  { %22 = dma.hbm_to_vmem [thread:$0]  %s408_s0, 256, %s17_s13, [#allocation3], %s335_s22, %s335_s22, %s336_s23  }
  0x13   :  { %s337_s26 = smov [#allocation5]   ;;  %s284_s30 = scalar_lea.hbm %s409_s1, 1024 }
  0x14   :  { %s28_s27 = sshll.u32 %s337_s26, 4  ;;  %p285_p8 = scmp.ne.s32.totalorder %s409_s1, %s284_s30  ;;  %s29_s27 = int_to_ptr.vmem [resolvable:$true] %s28_s27 }
  0x15   :  { %p288_p9 = scmp.lt.u32.totalorder %s284_s30, %s409_s1 }
  0x17   :  { %p290_p10 = pnand %p288_p9, %p285_p8 }
  0x19   :  { %293 = shalt.err (!%p290_p10)
}
  0x1a   :  { %s294_s8 = scalar_lea.vmem %s29_s27, 1024  ;;  %p299_p12 = scmp.lt.s32.totalorder %s29_s27, %s29_s27 }
  0x1b   :  { %p295_p11 = scmp.ne.s32.totalorder %s29_s27, %s294_s8  ;;  %p300_p13 = scmp.lt.s32.totalorder %s294_s8, %s294_s8 }
  0x1d   :  { %p301_p0 = por %p300_p13, %p299_p12 }
  0x1f   :  { %p302_p1 = pnand %p301_p0, %p295_p11 }
  0x21   :  { %305 = shalt.err (!%p302_p1)
}
  0x22   :  { %s338_s0 = smov 64   ;;  %s339_s9 = smov 4  }
  0x23   :  { %34 = dma.hbm_to_vmem [thread:$0]  %s409_s1, 1024, %s29_s27, [#allocation6], %s338_s0, %s338_s0, %s339_s9  }
  0x24   :  { %328 = dma.done.wait [#allocation3], 256  }
  0x25   :  { %329 = vsyncadd [#allocation3], 4294967040 }
  0x26   :  { %330 = dma.done.wait [#allocation6], 1024  }
  0x27   :  { %331 = vsyncadd [#allocation6], 4294966272  ;;  %v340_v0 = vmov 0.0   ;;  %vm341_vm0 = vmmov 0   ;;  %v246_v1 = vld [vmem:[#allocation5] sm:$0xff]   ;;  %v247_v2 = vld [vmem:[#allocation5 + $0x8] sm:$0xff]  }
  0x28   :  { %217 = vmatprep.subr.bf16.mxu0 %v340_v0  ;;  %233 = vmatprep.mubr.msk.bf16.mxu0 %vm341_vm0, %v340_v0  ;;  %v248_v3 = vld [vmem:[#allocation5 + $0x10] sm:$0xff]   ;;  %v249_v4 = vld [vmem:[#allocation5 + $0x18] sm:$0xff]   ;;  %v250_v5 = vld [vmem:[#allocation5 + $0x20] sm:$0xff]  }
  0x29   :  { %218 = vmatpush3.bf16.msra.mxu0 %v246_v1  ;;  %v251_v6 = vld [vmem:[#allocation5 + $0x28] sm:$0xff]   ;;  %v252_v7 = vld [vmem:[#allocation5 + $0x30] sm:$0xff]   ;;  %v253_v8 = vld [vmem:[#allocation5 + $0x38] sm:$0xff]  }
  0x2a   :  { %219 = vmatprep.subr.bf16.mxu0 %v340_v0  ;;  %v44_v9 = vld [vmem:[#allocation2] sm:$0xff]  ;;  %v45_v10 = vld [vmem:[#allocation2 + $0x8] sm:$0xff] }
  0x2b   :  { %v46_v11 = vpack.c.bf16 %v45_v10, %v44_v9  ;;  %v199_v12 = vld [vmem:[%s410_s2] ss:$0 sm:$0xff]  ;;  %s342_s2 = smov [#allocation7]  }
  0x2c   :  { %s186_s13 = sshll.u32 %s342_s2, 4  ;;  %s187_s13 = int_to_ptr.vmem [resolvable:$true] %s186_s13 }
  0x2d   :  { %220 = vmatpush3.bf16.msra.mxu0 %v247_v2  ;;  %s306_s14 = scalar_lea.vmem %s187_s13, 256  ;;  %p311_p3 = scmp.lt.s32.totalorder %s187_s13, %s187_s13 }
  0x2e   :  { %221 = vmatprep.subr.bf16.mxu0 %v340_v0  ;;  %p307_p2 = scmp.ne.s32.totalorder %s187_s13, %s306_s14  ;;  %p312_p4 = scmp.lt.s32.totalorder %s306_s14, %s306_s14 }
  0x30   :  { %p313_p5 = por %p312_p4, %p311_p3 }
  0x31   :  { %222 = vmatpush3.bf16.msra.mxu0 %v248_v3 }
  0x32   :  { %223 = vmatprep.subr.bf16.mxu0 %v340_v0  ;;  %p314_p6 = pnand %p313_p5, %p307_p2 }
  0x35   :  { %224 = vmatpush3.bf16.msra.mxu0 %v249_v4 }
  0x36   :  { %225 = vmatprep.subr.bf16.mxu0 %v340_v0 }
  0x39   :  { %226 = vmatpush3.bf16.msra.mxu0 %v250_v5 }
  0x3a   :  { %227 = vmatprep.subr.bf16.mxu0 %v340_v0 }
  0x3d   :  { %228 = vmatpush3.bf16.msra.mxu0 %v251_v6 }
  0x3e   :  { %229 = vmatprep.subr.bf16.mxu0 %v340_v0 }
  0x41   :  { %230 = vmatpush3.bf16.msra.mxu0 %v252_v7 }
  0x42   :  { %231 = vmatprep.subr.bf16.mxu0 %v340_v0 }
  0x45   :  { %232 = vmatpush3.bf16.msra.mxu0 %v253_v8 }
  0x48   :  { %234 = vmatmul.mubr.bf16.vlgmr.msra.gmra.mrb[0].mxu0 %v46_v11 }
 0x11b   :  { %v152_v13 = vpop.f32.mrb[0].mxu0 }
 0x11c   :  { %v153_v14 = vadd.f32 %v199_v12, %v152_v13  ;;  %v235_v15 = vpop.f32.mrb[1].mxu0 }
 0x11d   :  { %v155_v16 = vpop.f32.mrb[2].mxu0 }
 0x11e   :  { %159 = vmax.xlane.f32.xlu0 %v153_v14  ;;  %v236_v17 = vpop.f32.mrb[3].mxu0  ;;  %v156_v18 = vadd.f32 %v199_v12, %v155_v16 }
 0x122   :  { %161 = vmax.xlane.f32.xlu0 %v156_v18 }
 0x1ab   :  { %v160_v19 = vpop.xlane.xlu0 %159 }
 0x1ac   :  { %v163_v20 = vsub.f32 %v153_v14, %v160_v19 }
 0x1ae   :  { %v165_v21 = vmul.f32 1.442695, %v163_v20 }
 0x1af   :  { %v162_v22 = vpop.xlane.xlu0 %161 }
 0x1b0   :  { %254 = vpow2.f32 %v165_v21  ;;  %v164_v23 = vsub.f32 %v156_v18, %v162_v22 }
 0x1b2   :  { %v167_v24 = vmul.f32 1.442695, %v164_v23 }
 0x1b4   :  { %256 = vpow2.f32 %v167_v24 }
 0x1ba   :  { %v255_v25 = vpop.eup %254 }
 0x1bb   :  { %169 = vadd.xlane.f32.xlu1 %v255_v25  ;;  %v175_v29 = vmul.f32 %v255_v25, %v44_v9 }
 0x1be   :  { %v257_v26 = vpop.eup %256 }
 0x1bf   :  { %171 = vadd.xlane.f32.xlu1 %v257_v26  ;;  %v176_v32 = vmul.f32 %v257_v26, %v45_v10 }
 0x248   :  { %v170_v27 = vpop.xlane.xlu1 %169 }
 0x249   :  { %258 = vrcp.f32 %v170_v27 }
 0x24c   :  { %v172_v28 = vpop.xlane.xlu1 %171 }
 0x24d   :  { %260 = vrcp.f32 %v172_v28 }
 0x253   :  { %v259_v30 = vpop.eup %258 }
 0x254   :  { %v177_v31 = vmul.f32 %v259_v30, %v175_v29 }
 0x256   :  { %179 = vst [vmem:[#allocation7] sm:$0xff] %v177_v31 }
 0x257   :  { %v261_v33 = vpop.eup %260 }
 0x258   :  { %v178_v34 = vmul.f32 %v261_v33, %v176_v32 }
 0x25a   :  { %180 = vst [vmem:[#allocation7 + $0x8] sm:$0xff] %v178_v34 }
 0x25b   :  { %317 = shalt.err (!%p314_p6)
}
 0x25c   :  { %s318_s17 = scalar_lea.hbm %s411_s3, 256 }
 0x25d   :  { %p319_p7 = scmp.ne.s32.totalorder %s411_s3, %s318_s17  ;;  %p322_p8 = scmp.lt.u32.totalorder %s318_s17, %s411_s3 }
 0x25f   :  { %p324_p9 = pnand %p322_p8, %p319_p7 }
 0x261   :  { %327 = shalt.err (!%p324_p9)
}
 0x262   :  { %192 = dma.vmem_to_hbm [thread:$0]  %s187_s13, 256, %s411_s3, [#allocation4], %s335_s22, %s335_s22, %s336_s23  }
 0x263   :  { %332 = dma.done.wait [#allocation4], 256  }
 0x264   :  { %333 = vsyncadd [#allocation4], 4294967040 }
 0x265   :  { %196 = vsyncpa [#allocation3], 1 }
 0x266   :  { %197 = vsyncpa [#allocation6], 1 }
 0x267   :  { %198 = vsyncpa [#allocation4], 1 }

</bundles_post_ra>
